<compile_context>
chip_gen: v6e
topology: v6e:2x2x1
jax: 0.10.0
libtpu: 0.0.40
codegen_flags: <defaults>
</compile_context>

<pallas_src>
import jax
import jax.numpy as jnp
from jax.experimental import pallas as pl
from jax.experimental.pallas import tpu as pltpu


# ---------------------------------------------------------------------------
# Fused Pallas kernel
# ---------------------------------------------------------------------------
def _add_index_kernel(coord_ref, *refs):
    """For each (input, output) field pair: copy the field, add the x (column)
    grid to channel 1 and the y (row) grid to channel 2.

    Block shapes (per grid step = one batch element):
      coord_ref : (2, HW)            row 0 = x/column grid, row 1 = y/row grid
      field in  : (1, N_i, C_i, HW)
      field out : (1, N_i, C_i, HW)
    """
    n = len(refs) // 2
    in_refs, out_refs = refs[:n], refs[n:]

    col = coord_ref[0:1, :]   # (1, HW) -> broadcasts against (1, N, 1, HW)
    row = coord_ref[1:2, :]

    for x_ref, o_ref in zip(in_refs, out_refs):
        # Lane-dense (HW-minor) per-channel stores; collectively they cover the
        # whole output block, so no stale data is written back.
        o_ref[:, :, 0:1, :] = x_ref[:, :, 0:1, :]
        o_ref[:, :, 1:2, :] = x_ref[:, :, 1:2, :] + col
        o_ref[:, :, 2:3, :] = x_ref[:, :, 2:3, :] + row
        if x_ref.shape[2] > 3:
            o_ref[:, :, 3:, :] = x_ref[:, :, 3:, :]


def add_index_fields(fields):
    """fields: list of (B, N_i, C_i, H, W) arrays sharing B, H, W, dtype.
    Returns the list with the coordinate grid added to channels 1:3 of every
    field, computed in ONE fused pallas_call."""
    B, _, _, H, W = fields[0].shape
    dtype = fields[0].dtype
    HW = H * W
    for f in fields:
        assert f.shape[0] == B and f.shape[-2:] == (H, W) and f.dtype == dtype

    # Host-built coordinate grid (mirrors index_field_torch): channel 0 = x
    # (column index), channel 1 = y (row index); flattened row-major over
    # (H, W) so it lines up with the lane-dense H*W minor dim in the kernel.
    col = jnp.tile(jnp.arange(W, dtype=dtype), (H,))
    row = jnp.repeat(jnp.arange(H, dtype=dtype), W)
    coords = jnp.stack([col, row], axis=0)                       # (2, HW)

    flat = [f.reshape(f.shape[0], f.shape[1], f.shape[2], HW) for f in fields]

    itemsize = jnp.dtype(dtype).itemsize
    total_bytes = sum(int(f.size) * itemsize for f in flat)
    n_adds = sum(int(f.shape[0] * f.shape[1]) for f in flat) * 2 * HW
    cost = pl.CostEstimate(
        flops=n_adds,
        transcendentals=0,
        bytes_accessed=2 * total_bytes + int(coords.size) * itemsize,
    )

    in_specs = [pl.BlockSpec((2, HW), lambda b: (0, 0))]
    in_specs += [
        pl.BlockSpec((1, f.shape[1], f.shape[2], HW), lambda b: (b, 0, 0, 0))
        for f in flat
    ]
    out_specs = tuple(
        pl.BlockSpec((1, f.shape[1], f.shape[2], HW), lambda b: (b, 0, 0, 0))
        for f in flat
    )
    out_shape = tuple(jax.ShapeDtypeStruct(f.shape, f.dtype) for f in flat)

    # Note: per-batch slabs are small (keypoint heads are a few MB at
    # production resolutions), so double-buffered in+out tiles stay far below
    # the v7x 64 MiB VMEM ceiling; grid=(B,) keeps >=2 parallel steps for the
    # two TensorCores on v7x.
    outs = pl.pallas_call(
        _add_index_kernel,
        out_shape=out_shape,
        grid=(B,),
        in_specs=in_specs,
        out_specs=out_specs,
        compiler_params=pltpu.CompilerParams(
            dimension_semantics=("parallel",)),
        cost_estimate=cost,
    )(coords, *flat)

    return [o.reshape(f.shape) for o, f in zip(outs, fields)]


# ---------------------------------------------------------------------------
# Collector glue (pure JAX reshapes / concats, mirrors the PyTorch module)
# ---------------------------------------------------------------------------
def selector(inputs, index):
    if not isinstance(index, (list, tuple)):
        return inputs[index]
    for ind in index:
        inputs = inputs[ind]
    return inputs


def concat_fields(fields):
    reshaped = []
    for f in fields:
        if f.ndim == 6:
            reshaped.append(
                f.reshape(f.shape[0], f.shape[1],
                          f.shape[2] * f.shape[3], *f.shape[4:]))
        else:
            reshaped.append(f)
    return jnp.concatenate(reshaped, axis=2)


def concat_heads(heads):
    if not heads:
        return None
    if len(heads) == 1:
        return heads[0]
    return jnp.concatenate(heads, axis=1)


def cif_pan_ball_cent_collector(heads, cif_indices):
    """heads: list of head outputs (each a list of field tensors).
    Returns (cif_head, heads[1], cif_ball_head, cif_cent_head)."""
    heads_cent = heads[3]
    heads_ball = heads[2]

    cif_heads = [concat_fields(selector(heads, hi)) for hi in cif_indices]
    cif_ball_heads = [concat_fields(heads_ball)]
    cif_cent_heads = [concat_fields(heads_cent)]

    cif_head = concat_heads(cif_heads)
    cif_ball_head = concat_heads(cif_ball_heads)
    cif_cent_head = concat_heads(cif_cent_heads)

    # The reference adds the index field derived from cif_head's spatial shape
    # to all three heads; spatial dims must match for that broadcast.
    assert cif_ball_head.shape[-2:] == cif_head.shape[-2:]
    assert cif_cent_head.shape[-2:] == cif_head.shape[-2:]

    cif_head, cif_ball_head, cif_cent_head = add_index_fields(
        [cif_head, cif_ball_head, cif_cent_head])

    # TODO(synk): PyTorch does the add in place (add_); here the three heads
    # are returned as fresh outputs (no input_output_aliases), which keeps the
    # writeback simple and avoids partial-write hazards on untouched channels.
    return (cif_head, heads[1], cif_ball_head, cif_cent_head)


# ---------------------------------------------------------------------------
# Pure-JAX reference for verification
# ---------------------------------------------------------------------------
def _ref_add_index(field):
    B, N, C, H, W = field.shape
    xgrid = jnp.broadcast_to(jnp.arange(W, dtype=field.dtype)[None, :], (H, W))
    ygrid = jnp.broadcast_to(jnp.arange(H, dtype=field.dtype)[:, None], (H, W))
    idx = jnp.stack([xgrid, ygrid], axis=0)[None, None]  # (1, 1, 2, H, W)
    return field.at[:, :, 1:3].add(idx)


def _make_head(key, B, N, H, W):
    k1, k2, k3, k4 = jax.random.split(key, 4)
    conf = jax.random.normal(k1, (B, N, 1, H, W), jnp.float32)       # 5-dim
    reg = jax.random.normal(k2, (B, N, 1, 2, H, W), jnp.float32)     # 6-dim
    spread = jax.random.normal(k3, (B, N, 1, H, W), jnp.float32)     # 5-dim
    scale = jax.random.normal(k4, (B, N, 1, H, W), jnp.float32)      # 5-dim
    return [conf, reg, spread, scale]                                # C_total = 5


if __name__ == "__main__":
    key = jax.random.PRNGKey(0)
    k0, k1, k2, k3 = jax.random.split(key, 4)

    B, H, W = 2, 16, 16
    N_KP, N_BALL, N_CENT = 4, 1, 1

    head_cif = _make_head(k0, B, N_KP, H, W)        # heads[0] : keypoint CIF
    head_caf = [jax.random.normal(k1, (B, 8, 9, H, W), jnp.float32)]  # heads[1]
    head_ball = _make_head(k2, B, N_BALL, H, W)     # heads[2] : ball CIF
    head_cent = _make_head(k3, B, N_CENT, H, W)     # heads[3] : centroid CIF

    heads = [head_cif, head_caf, head_ball, head_cent]
    cif_indices = [0]

    cif_head, caf_head, ball_head, cent_head = jax.tree.map(
        jax.block_until_ready,
        cif_pan_ball_cent_collector(heads, cif_indices))

    # Verify against a pure-JAX reference of the same collector semantics.
    ref_cif = _ref_add_index(concat_fields(head_cif))
    ref_ball = _ref_add_index(concat_fields(head_ball))
    ref_cent = _ref_add_index(concat_fields(head_cent))

    assert cif_head.shape == (B, N_KP, 5, H, W)
    assert ball_head.shape == (B, N_BALL, 5, H, W)
    assert cent_head.shape == (B, N_CENT, 5, H, W)
    assert jnp.allclose(cif_head, ref_cif, atol=1e-6)
    assert jnp.allclose(ball_head, ref_ball, atol=1e-6)
    assert jnp.allclose(cent_head, ref_cent, atol=1e-6)
    assert jnp.array_equal(caf_head[0], head_caf[0])

    print("KERNEL_OK")
</pallas_src>

<mosaic_0001>
module attributes {stable_mosaic.version = 11 : i64} {
  func.func @_add_index_kernel(%arg0: i32, %arg1: memref<2x256xf32, #tpu.memory_space<vmem>>, %arg2: memref<1x4x5x256xf32, #tpu.memory_space<vmem>>, %arg3: memref<1x1x5x256xf32, #tpu.memory_space<vmem>>, %arg4: memref<1x1x5x256xf32, #tpu.memory_space<vmem>>, %arg5: memref<1x4x5x256xf32, #tpu.memory_space<vmem>>, %arg6: memref<1x1x5x256xf32, #tpu.memory_space<vmem>>, %arg7: memref<1x1x5x256xf32, #tpu.memory_space<vmem>>) attributes {dimension_semantics = [#tpu.dimension_semantics<parallel>], iteration_bounds = array<i64: 2>, scalar_prefetch = 0 : i64, scratch_operands = 0 : i64, tpu.core_type = #tpu.core_type<tc>, window_params = [{pipeline_mode = #tpu.pipeline_mode<synchronous>, transform_indices = @transform_0, window_bounds = array<i64: 2, 256>}, {transform_indices = @transform_1, window_bounds = array<i64: 1, 4, 5, 256>}, {transform_indices = @transform_2, window_bounds = array<i64: 1, 1, 5, 256>}, {transform_indices = @transform_3, window_bounds = array<i64: 1, 1, 5, 256>}, {transform_indices = @transform_4, window_bounds = array<i64: 1, 4, 5, 256>}, {transform_indices = @transform_5, window_bounds = array<i64: 1, 1, 5, 256>}, {transform_indices = @transform_6, window_bounds = array<i64: 1, 1, 5, 256>}]} {
    %c0 = arith.constant 0 : index
    %c0_0 = arith.constant 0 : index
    %0 = vector.load %arg1[%c0, %c0_0] : memref<2x256xf32, #tpu.memory_space<vmem>>, vector<1x256xf32>
    %c1 = arith.constant 1 : index
    %c0_1 = arith.constant 0 : index
    %1 = vector.load %arg1[%c1, %c0_1] : memref<2x256xf32, #tpu.memory_space<vmem>>, vector<1x256xf32>
    %c0_2 = arith.constant 0 : index
    %c0_3 = arith.constant 0 : index
    %c0_4 = arith.constant 0 : index
    %c0_5 = arith.constant 0 : index
    %2 = vector.load %arg2[%c0_2, %c0_3, %c0_4, %c0_5] : memref<1x4x5x256xf32, #tpu.memory_space<vmem>>, vector<1x4x1x256xf32>
    %c0_6 = arith.constant 0 : index
    %c0_7 = arith.constant 0 : index
    %c0_8 = arith.constant 0 : index
    %c0_9 = arith.constant 0 : index
    %3 = vector.load %arg5[%c0_6, %c0_7, %c0_8, %c0_9] : memref<1x4x5x256xf32, #tpu.memory_space<vmem>>, vector<1x4x1x256xf32>
    tpu.vector_store %arg5[%c0_6, %c0_7, %c0_8, %c0_9], %2 {strides = array<i32>} : memref<1x4x5x256xf32, #tpu.memory_space<vmem>>, vector<1x4x1x256xf32>,
    %c0_10 = arith.constant 0 : index
    %c0_11 = arith.constant 0 : index
    %c1_12 = arith.constant 1 : index
    %c0_13 = arith.constant 0 : index
    %4 = vector.load %arg2[%c0_10, %c0_11, %c1_12, %c0_13] : memref<1x4x5x256xf32, #tpu.memory_space<vmem>>, vector<1x4x1x256xf32>
    %5 = vector.shape_cast %0 : vector<1x256xf32> to vector<1x1x1x256xf32>
    %6 = vector.broadcast %5 : vector<1x1x1x256xf32> to vector<1x4x1x256xf32>
    %7 = arith.addf %4, %6 : vector<1x4x1x256xf32>
    %c0_14 = arith.constant 0 : index
    %c0_15 = arith.constant 0 : index
    %c1_16 = arith.constant 1 : index
    %c0_17 = arith.constant 0 : index
    %8 = vector.load %arg5[%c0_14, %c0_15, %c1_16, %c0_17] : memref<1x4x5x256xf32, #tpu.memory_space<vmem>>, vector<1x4x1x256xf32>
    tpu.vector_store %arg5[%c0_14, %c0_15, %c1_16, %c0_17], %7 {strides = array<i32>} : memref<1x4x5x256xf32, #tpu.memory_space<vmem>>, vector<1x4x1x256xf32>,
    %c0_18 = arith.constant 0 : index
    %c0_19 = arith.constant 0 : index
    %c2 = arith.constant 2 : index
    %c0_20 = arith.constant 0 : index
    %9 = vector.load %arg2[%c0_18, %c0_19, %c2, %c0_20] : memref<1x4x5x256xf32, #tpu.memory_space<vmem>>, vector<1x4x1x256xf32>
    %10 = vector.shape_cast %1 : vector<1x256xf32> to vector<1x1x1x256xf32>
    %11 = vector.broadcast %10 : vector<1x1x1x256xf32> to vector<1x4x1x256xf32>
    %12 = arith.addf %9, %11 : vector<1x4x1x256xf32>
    %c0_21 = arith.constant 0 : index
    %c0_22 = arith.constant 0 : index
    %c2_23 = arith.constant 2 : index
    %c0_24 = arith.constant 0 : index
    %13 = vector.load %arg5[%c0_21, %c0_22, %c2_23, %c0_24] : memref<1x4x5x256xf32, #tpu.memory_space<vmem>>, vector<1x4x1x256xf32>
    tpu.vector_store %arg5[%c0_21, %c0_22, %c2_23, %c0_24], %12 {strides = array<i32>} : memref<1x4x5x256xf32, #tpu.memory_space<vmem>>, vector<1x4x1x256xf32>,
    %c0_25 = arith.constant 0 : index
    %c0_26 = arith.constant 0 : index
    %c3 = arith.constant 3 : index
    %c0_27 = arith.constant 0 : index
    %14 = vector.load %arg2[%c0_25, %c0_26, %c3, %c0_27] : memref<1x4x5x256xf32, #tpu.memory_space<vmem>>, vector<1x4x2x256xf32>
    %c0_28 = arith.constant 0 : index
    %c0_29 = arith.constant 0 : index
    %c3_30 = arith.constant 3 : index
    %c0_31 = arith.constant 0 : index
    %15 = vector.load %arg5[%c0_28, %c0_29, %c3_30, %c0_31] : memref<1x4x5x256xf32, #tpu.memory_space<vmem>>, vector<1x4x2x256xf32>
    tpu.vector_store %arg5[%c0_28, %c0_29, %c3_30, %c0_31], %14 {strides = array<i32>} : memref<1x4x5x256xf32, #tpu.memory_space<vmem>>, vector<1x4x2x256xf32>,
    %c0_32 = arith.constant 0 : index
    %c0_33 = arith.constant 0 : index
    %c0_34 = arith.constant 0 : index
    %c0_35 = arith.constant 0 : index
    %16 = vector.load %arg3[%c0_32, %c0_33, %c0_34, %c0_35] : memref<1x1x5x256xf32, #tpu.memory_space<vmem>>, vector<1x1x1x256xf32>
    %c0_36 = arith.constant 0 : index
    %c0_37 = arith.constant 0 : index
    %c0_38 = arith.constant 0 : index
    %c0_39 = arith.constant 0 : index
    %17 = vector.load %arg6[%c0_36, %c0_37, %c0_38, %c0_39] : memref<1x1x5x256xf32, #tpu.memory_space<vmem>>, vector<1x1x1x256xf32>
    tpu.vector_store %arg6[%c0_36, %c0_37, %c0_38, %c0_39], %16 {strides = array<i32>} : memref<1x1x5x256xf32, #tpu.memory_space<vmem>>, vector<1x1x1x256xf32>,
    %c0_40 = arith.constant 0 : index
    %c0_41 = arith.constant 0 : index
    %c1_42 = arith.constant 1 : index
    %c0_43 = arith.constant 0 : index
    %18 = vector.load %arg3[%c0_40, %c0_41, %c1_42, %c0_43] : memref<1x1x5x256xf32, #tpu.memory_space<vmem>>, vector<1x1x1x256xf32>
    %19 = vector.shape_cast %0 : vector<1x256xf32> to vector<1x1x1x256xf32>
    %20 = arith.addf %18, %19 : vector<1x1x1x256xf32>
    %c0_44 = arith.constant 0 : index
    %c0_45 = arith.constant 0 : index
    %c1_46 = arith.constant 1 : index
    %c0_47 = arith.constant 0 : index
    %21 = vector.load %arg6[%c0_44, %c0_45, %c1_46, %c0_47] : memref<1x1x5x256xf32, #tpu.memory_space<vmem>>, vector<1x1x1x256xf32>
    tpu.vector_store %arg6[%c0_44, %c0_45, %c1_46, %c0_47], %20 {strides = array<i32>} : memref<1x1x5x256xf32, #tpu.memory_space<vmem>>, vector<1x1x1x256xf32>,
    %c0_48 = arith.constant 0 : index
    %c0_49 = arith.constant 0 : index
    %c2_50 = arith.constant 2 : index
    %c0_51 = arith.constant 0 : index
    %22 = vector.load %arg3[%c0_48, %c0_49, %c2_50, %c0_51] : memref<1x1x5x256xf32, #tpu.memory_space<vmem>>, vector<1x1x1x256xf32>
    %23 = vector.shape_cast %1 : vector<1x256xf32> to vector<1x1x1x256xf32>
    %24 = arith.addf %22, %23 : vector<1x1x1x256xf32>
    %c0_52 = arith.constant 0 : index
    %c0_53 = arith.constant 0 : index
    %c2_54 = arith.constant 2 : index
    %c0_55 = arith.constant 0 : index
    %25 = vector.load %arg6[%c0_52, %c0_53, %c2_54, %c0_55] : memref<1x1x5x256xf32, #tpu.memory_space<vmem>>, vector<1x1x1x256xf32>
    tpu.vector_store %arg6[%c0_52, %c0_53, %c2_54, %c0_55], %24 {strides = array<i32>} : memref<1x1x5x256xf32, #tpu.memory_space<vmem>>, vector<1x1x1x256xf32>,
    %c0_56 = arith.constant 0 : index
    %c0_57 = arith.constant 0 : index
    %c3_58 = arith.constant 3 : index
    %c0_59 = arith.constant 0 : index
    %26 = vector.load %arg3[%c0_56, %c0_57, %c3_58, %c0_59] : memref<1x1x5x256xf32, #tpu.memory_space<vmem>>, vector<1x1x2x256xf32>
    %c0_60 = arith.constant 0 : index
    %c0_61 = arith.constant 0 : index
    %c3_62 = arith.constant 3 : index
    %c0_63 = arith.constant 0 : index
    %27 = vector.load %arg6[%c0_60, %c0_61, %c3_62, %c0_63] : memref<1x1x5x256xf32, #tpu.memory_space<vmem>>, vector<1x1x2x256xf32>
    tpu.vector_store %arg6[%c0_60, %c0_61, %c3_62, %c0_63], %26 {strides = array<i32>} : memref<1x1x5x256xf32, #tpu.memory_space<vmem>>, vector<1x1x2x256xf32>,
    %c0_64 = arith.constant 0 : index
    %c0_65 = arith.constant 0 : index
    %c0_66 = arith.constant 0 : index
    %c0_67 = arith.constant 0 : index
    %28 = vector.load %arg4[%c0_64, %c0_65, %c0_66, %c0_67] : memref<1x1x5x256xf32, #tpu.memory_space<vmem>>, vector<1x1x1x256xf32>
    %c0_68 = arith.constant 0 : index
    %c0_69 = arith.constant 0 : index
    %c0_70 = arith.constant 0 : index
    %c0_71 = arith.constant 0 : index
    %29 = vector.load %arg7[%c0_68, %c0_69, %c0_70, %c0_71] : memref<1x1x5x256xf32, #tpu.memory_space<vmem>>, vector<1x1x1x256xf32>
    tpu.vector_store %arg7[%c0_68, %c0_69, %c0_70, %c0_71], %28 {strides = array<i32>} : memref<1x1x5x256xf32, #tpu.memory_space<vmem>>, vector<1x1x1x256xf32>,
    %c0_72 = arith.constant 0 : index
    %c0_73 = arith.constant 0 : index
    %c1_74 = arith.constant 1 : index
    %c0_75 = arith.constant 0 : index
    %30 = vector.load %arg4[%c0_72, %c0_73, %c1_74, %c0_75] : memref<1x1x5x256xf32, #tpu.memory_space<vmem>>, vector<1x1x1x256xf32>
    %31 = vector.shape_cast %0 : vector<1x256xf32> to vector<1x1x1x256xf32>
    %32 = arith.addf %30, %31 : vector<1x1x1x256xf32>
    %c0_76 = arith.constant 0 : index
    %c0_77 = arith.constant 0 : index
    %c1_78 = arith.constant 1 : index
    %c0_79 = arith.constant 0 : index
    %33 = vector.load %arg7[%c0_76, %c0_77, %c1_78, %c0_79] : memref<1x1x5x256xf32, #tpu.memory_space<vmem>>, vector<1x1x1x256xf32>
    tpu.vector_store %arg7[%c0_76, %c0_77, %c1_78, %c0_79], %32 {strides = array<i32>} : memref<1x1x5x256xf32, #tpu.memory_space<vmem>>, vector<1x1x1x256xf32>,
    %c0_80 = arith.constant 0 : index
    %c0_81 = arith.constant 0 : index
    %c2_82 = arith.constant 2 : index
    %c0_83 = arith.constant 0 : index
    %34 = vector.load %arg4[%c0_80, %c0_81, %c2_82, %c0_83] : memref<1x1x5x256xf32, #tpu.memory_space<vmem>>, vector<1x1x1x256xf32>
    %35 = vector.shape_cast %1 : vector<1x256xf32> to vector<1x1x1x256xf32>
    %36 = arith.addf %34, %35 : vector<1x1x1x256xf32>
    %c0_84 = arith.constant 0 : index
    %c0_85 = arith.constant 0 : index
    %c2_86 = arith.constant 2 : index
    %c0_87 = arith.constant 0 : index
    %37 = vector.load %arg7[%c0_84, %c0_85, %c2_86, %c0_87] : memref<1x1x5x256xf32, #tpu.memory_space<vmem>>, vector<1x1x1x256xf32>
    tpu.vector_store %arg7[%c0_84, %c0_85, %c2_86, %c0_87], %36 {strides = array<i32>} : memref<1x1x5x256xf32, #tpu.memory_space<vmem>>, vector<1x1x1x256xf32>,
    %c0_88 = arith.constant 0 : index
    %c0_89 = arith.constant 0 : index
    %c3_90 = arith.constant 3 : index
    %c0_91 = arith.constant 0 : index
    %38 = vector.load %arg4[%c0_88, %c0_89, %c3_90, %c0_91] : memref<1x1x5x256xf32, #tpu.memory_space<vmem>>, vector<1x1x2x256xf32>
    %c0_92 = arith.constant 0 : index
    %c0_93 = arith.constant 0 : index
    %c3_94 = arith.constant 3 : index
    %c0_95 = arith.constant 0 : index
    %39 = vector.load %arg7[%c0_92, %c0_93, %c3_94, %c0_95] : memref<1x1x5x256xf32, #tpu.memory_space<vmem>>, vector<1x1x2x256xf32>
    tpu.vector_store %arg7[%c0_92, %c0_93, %c3_94, %c0_95], %38 {strides = array<i32>} : memref<1x1x5x256xf32, #tpu.memory_space<vmem>>, vector<1x1x2x256xf32>,
    return
  }
  func.func @transform_0(%arg0: i32) -> (i32, i32) {
    %c0_i32 = arith.constant 0 : i32
    %c0_i32_0 = arith.constant 0 : i32
    %c0_i32_1 = arith.constant 0 : i32
    return %c0_i32, %c0_i32_0 : i32, i32
  }
  func.func @transform_1(%arg0: i32) -> (i32, i32, i32, i32) {
    %c0_i32 = arith.constant 0 : i32
    %c0_i32_0 = arith.constant 0 : i32
    %c0_i32_1 = arith.constant 0 : i32
    %c0_i32_2 = arith.constant 0 : i32
    return %arg0, %c0_i32, %c0_i32_0, %c0_i32_1 : i32, i32, i32, i32
  }
  func.func @transform_2(%arg0: i32) -> (i32, i32, i32, i32) {
    %c0_i32 = arith.constant 0 : i32
    %c0_i32_0 = arith.constant 0 : i32
    %c0_i32_1 = arith.constant 0 : i32
    %c0_i32_2 = arith.constant 0 : i32
    return %arg0, %c0_i32, %c0_i32_0, %c0_i32_1 : i32, i32, i32, i32
  }
  func.func @transform_3(%arg0: i32) -> (i32, i32, i32, i32) {
    %c0_i32 = arith.constant 0 : i32
    %c0_i32_0 = arith.constant 0 : i32
    %c0_i32_1 = arith.constant 0 : i32
    %c0_i32_2 = arith.constant 0 : i32
    return %arg0, %c0_i32, %c0_i32_0, %c0_i32_1 : i32, i32, i32, i32
  }
  func.func @transform_4(%arg0: i32) -> (i32, i32, i32, i32) {
    %c0_i32 = arith.constant 0 : i32
    %c0_i32_0 = arith.constant 0 : i32
    %c0_i32_1 = arith.constant 0 : i32
    %c0_i32_2 = arith.constant 0 : i32
    return %arg0, %c0_i32, %c0_i32_0, %c0_i32_1 : i32, i32, i32, i32
  }
  func.func @transform_5(%arg0: i32) -> (i32, i32, i32, i32) {
    %c0_i32 = arith.constant 0 : i32
    %c0_i32_0 = arith.constant 0 : i32
    %c0_i32_1 = arith.constant 0 : i32
    %c0_i32_2 = arith.constant 0 : i32
    return %arg0, %c0_i32, %c0_i32_0, %c0_i32_1 : i32, i32, i32, i32
  }
  func.func @transform_6(%arg0: i32) -> (i32, i32, i32, i32) {
    %c0_i32 = arith.constant 0 : i32
    %c0_i32_0 = arith.constant 0 : i32
    %c0_i32_1 = arith.constant 0 : i32
    %c0_i32_2 = arith.constant 0 : i32
    return %arg0, %c0_i32, %c0_i32_0, %c0_i32_1 : i32, i32, i32, i32
  }
}

</mosaic_0001>

<bundles_post_ra>
// kernel: tpu_custom_call.1
= control target key start
LH: loop header
LB: loop body
LE: loop exit
PB: predicated region body
PF: predicated region fallthrough
CT: control target
= control target key end

     0   :  { %s696_s21 = smov 0   ;;  %s844_s0 = inlined_call_operand.vmem [shape: f32[2,256], index: 0, kind: input, shape index: {}]   ;;  %s845_s1 = inlined_call_operand.vmem [shape: f32[2,4,5,256], index: 1, kind: input, shape index: {}]   ;;  %s846_s2 = inlined_call_operand.vmem [shape: f32[2,1,5,256], index: 2, kind: input, shape index: {}]   ;;  %s847_s3 = inlined_call_operand.vmem [shape: f32[2,1,5,256], index: 3, kind: input, shape index: {}]   ;;  %s848_s4 = inlined_call_operand.vmem [shape: f32[2,4,5,256], index: 4, kind: output, shape index: {0}]   ;;  %s849_s5 = inlined_call_operand.vmem [shape: f32[2,1,5,256], index: 5, kind: output, shape index: {1}]   ;;  %s850_s6 = inlined_call_operand.vmem [shape: f32[2,1,5,256], index: 6, kind: output, shape index: {2}]  }
   0x1 LB: > { %s589_s22 = sadd.s32 4294967295, %s659_s21   ;;  %p593_p0 = scmp.ge.s32.totalorder %s659_s21, 1  ;;  %s659_s21 = sphi %s696_s21, %s17_s21  }
   0x2   : > { %p237_p1 = scmp.lt.s32.totalorder %s659_s21, 3 }
   0x4   : > { %p238_p2 = pnand %p593_p0, %p237_p1 }
   0x5   : > { %p287_p3 = scmp.lt.s32.totalorder (!%p238_p2), %s589_s22, 1 }
   0x6   : > { %241 = sbr.rel (%p238_p2) target bundleno = 41 (0x29), region = 36 }
   0xb   : > { %v327_v0 = vlaneseq  ;;  %s854_s22 = smov (!%p287_p3, %s589_s22), 1  ;;  %v723_v2 = vld [vmem:[%s844_s0] ss:$2 sm:$0x3] }
   0xc   : > { %s639_s23 = sshll.u32 %s854_s22, 6  ;;  %s708_s24 = sshll.u32 %s854_s22, 4  ;;  %v730_v5 = vld [vmem:[%s844_s0 + $0x1] ss:$2 sm:$0x3] }
   0xd   : > { %vm704_vm0 = vcmp.lt.s32.totalorder %v327_v0, 256  ;;  %s713_s27 = scalar_lea.vmem %s845_s1, %s639_s23  ;;  %s718_s30 = scalar_lea.vmem %s848_s4, %s639_s23 }
   0xe   : > { %v320_v3 = vld [vmem:[%s713_s27] ss:$8 sm:$0x3]  ;;  %v607_v4 = vld [vmem:[%s713_s27 + $0x10] ss:$8 sm:$0x3]  ;;  %s296_s13 = scalar_lea.vmem %s846_s2, %s708_s24  ;;  %s785_s16 = scalar_lea.vmem %s849_s5, %s708_s24 }
   0xf   : > { %331 = vst.msk [vmem:[%s718_s30] ss:$8 sm:$0x3] %vm704_vm0, %v320_v3  ;;  %610 = vst.msk [vmem:[%s718_s30 + $0x10] ss:$8 sm:$0x3] %vm704_vm0, %v607_v4  ;;  %s301_s19 = scalar_lea.vmem %s847_s3, %s708_s24  ;;  %s316_s23 = scalar_lea.vmem %s850_s6, %s708_s24 }
  0x10   : > { %v608_v6 = vld [vmem:[%s713_s27 + $0x20] ss:$8 sm:$0x3]  ;;  %v609_v7 = vld [vmem:[%s713_s27 + $0x30] ss:$8 sm:$0x3] }
  0x11   : > { %611 = vst.msk [vmem:[%s718_s30 + $0x20] ss:$8 sm:$0x3] %vm704_vm0, %v608_v6  ;;  %612 = vst.msk [vmem:[%s718_s30 + $0x30] ss:$8 sm:$0x3] %vm704_vm0, %v609_v7 }
  0x12   : > { %v613_v8 = vld [vmem:[%s713_s27 + $0x1] ss:$8 sm:$0x3]  ;;  %v614_v9 = vld [vmem:[%s713_s27 + $0x11] ss:$8 sm:$0x3] }
  0x13   : > { %v350_v10 = vadd.f32 %v613_v8, %v723_v2  ;;  %v351_v11 = vadd.f32 %v614_v9, %v723_v2  ;;  %v615_v12 = vld [vmem:[%s713_s27 + $0x21] ss:$8 sm:$0x3]  ;;  %v616_v13 = vld [vmem:[%s713_s27 + $0x31] ss:$8 sm:$0x3] }
  0x14   : > { %v352_v14 = vadd.f32 %v615_v12, %v723_v2  ;;  %v353_v15 = vadd.f32 %v616_v13, %v723_v2  ;;  %v621_v16 = vld [vmem:[%s713_s27 + $0x2] ss:$8 sm:$0x3]  ;;  %v622_v17 = vld [vmem:[%s713_s27 + $0x12] ss:$8 sm:$0x3] }
  0x15   : > { %617 = vst.msk [vmem:[%s718_s30 + $0x1] ss:$8 sm:$0x3] %vm704_vm0, %v350_v10  ;;  %618 = vst.msk [vmem:[%s718_s30 + $0x11] ss:$8 sm:$0x3] %vm704_vm0, %v351_v11  ;;  %v374_v18 = vadd.f32 %v621_v16, %v730_v5  ;;  %v375_v19 = vadd.f32 %v622_v17, %v730_v5 }
  0x16   : > { %v623_v20 = vld [vmem:[%s713_s27 + $0x22] ss:$8 sm:$0x3]  ;;  %v624_v21 = vld [vmem:[%s713_s27 + $0x32] ss:$8 sm:$0x3] }
  0x17   : > { %619 = vst.msk [vmem:[%s718_s30 + $0x21] ss:$8 sm:$0x3] %vm704_vm0, %v352_v14  ;;  %620 = vst.msk [vmem:[%s718_s30 + $0x31] ss:$8 sm:$0x3] %vm704_vm0, %v353_v15  ;;  %v376_v22 = vadd.f32 %v623_v20, %v730_v5  ;;  %v377_v23 = vadd.f32 %v624_v21, %v730_v5 }
  0x18   : > { %v390_v24 = vld [vmem:[%s713_s27] sm:$0x18]  ;;  %v391_v25 = vld [vmem:[%s713_s27 + $0x8] sm:$0x18]  ;;  %v392_v26 = vld [vmem:[%s713_s27 + $0x10] sm:$0x18] }
  0x19   : > { %625 = vst.msk [vmem:[%s718_s30 + $0x2] ss:$8 sm:$0x3] %vm704_vm0, %v374_v18  ;;  %626 = vst.msk [vmem:[%s718_s30 + $0x12] ss:$8 sm:$0x3] %vm704_vm0, %v375_v19 }
  0x1a   : > { %398 = vst [vmem:[%s718_s30] sm:$0x18] %v390_v24  ;;  %399 = vst [vmem:[%s718_s30 + $0x8] sm:$0x18] %v391_v25  ;;  %v393_v27 = vld [vmem:[%s713_s27 + $0x18] sm:$0x18] }
  0x1b   : > { %400 = vst [vmem:[%s718_s30 + $0x10] sm:$0x18] %v392_v26  ;;  %v394_v28 = vld [vmem:[%s713_s27 + $0x20] sm:$0x18]  ;;  %v395_v29 = vld [vmem:[%s713_s27 + $0x28] sm:$0x18] }
  0x1c   : > { %627 = vst.msk [vmem:[%s718_s30 + $0x22] ss:$8 sm:$0x3] %vm704_vm0, %v376_v22  ;;  %628 = vst.msk [vmem:[%s718_s30 + $0x32] ss:$8 sm:$0x3] %vm704_vm0, %v377_v23 }
  0x1d   : > { %401 = vst [vmem:[%s718_s30 + $0x18] sm:$0x18] %v393_v27  ;;  %402 = vst [vmem:[%s718_s30 + $0x20] sm:$0x18] %v394_v28  ;;  %v396_v30 = vld [vmem:[%s713_s27 + $0x30] sm:$0x18] }
  0x1e   : > { %403 = vst [vmem:[%s718_s30 + $0x28] sm:$0x18] %v395_v29  ;;  %v397_v31 = vld [vmem:[%s713_s27 + $0x38] sm:$0x18]  ;;  %v421_v32 = vld [vmem:[%s296_s13] sm:$0x18] }
  0x1f   : > { %404 = vst [vmem:[%s718_s30 + $0x30] sm:$0x18] %v396_v30  ;;  %405 = vst [vmem:[%s718_s30 + $0x38] sm:$0x18] %v397_v31  ;;  %v422_v37 = vld [vmem:[%s296_s13 + $0x8] sm:$0x18] }
  0x20   : > { %v406_v33 = vld [vmem:[%s296_s13] ss:$8 sm:$0x3]  ;;  %v629_v34 = vld [vmem:[%s296_s13 + $0x1] ss:$8 sm:$0x3] }
  0x21   : > { %423 = vst [vmem:[%s785_s16] sm:$0x18] %v421_v32  ;;  %407 = vst.msk [vmem:[%s785_s16] ss:$8 sm:$0x3] %vm704_vm0, %v406_v33  ;;  %v411_v35 = vadd.f32 %v629_v34, %v723_v2  ;;  %v440_v43 = vld [vmem:[%s301_s19] sm:$0x18] }
  0x22   : > { %v631_v36 = vld [vmem:[%s296_s13 + $0x2] ss:$8 sm:$0x3]  ;;  %424 = vst [vmem:[%s785_s16 + $0x8] sm:$0x18] %v422_v37  ;;  %442 = vst [vmem:[%s316_s23] sm:$0x18] %v440_v43 }
  0x23   : > { %v417_v38 = vadd.f32 %v631_v36, %v730_v5  ;;  %v425_v39 = vld [vmem:[%s301_s19] ss:$8 sm:$0x3]  ;;  %v633_v40 = vld [vmem:[%s301_s19 + $0x1] ss:$8 sm:$0x3] }
  0x24   : > { %630 = vst.msk [vmem:[%s785_s16 + $0x1] ss:$8 sm:$0x3] %vm704_vm0, %v411_v35  ;;  %426 = vst.msk [vmem:[%s316_s23] ss:$8 sm:$0x3] %vm704_vm0, %v425_v39  ;;  %v430_v41 = vadd.f32 %v633_v40, %v723_v2 }
  0x25   : > { %v635_v42 = vld [vmem:[%s301_s19 + $0x2] ss:$8 sm:$0x3]  ;;  %632 = vst.msk [vmem:[%s785_s16 + $0x2] ss:$8 sm:$0x3] %vm704_vm0, %v417_v38 }
  0x26   : > { %v436_v44 = vadd.f32 %v635_v42, %v730_v5  ;;  %v441_v45 = vld [vmem:[%s301_s19 + $0x8] sm:$0x18]  ;;  %634 = vst.msk [vmem:[%s316_s23 + $0x1] ss:$8 sm:$0x3] %vm704_vm0, %v430_v41 }
  0x27   : > { %443 = vst [vmem:[%s316_s23 + $0x8] sm:$0x18] %v441_v45 }
  0x28   : > { %636 = vst.msk [vmem:[%s316_s23 + $0x2] ss:$8 sm:$0x3] %vm704_vm0, %v436_v44 }
  0x29 PF: > { %s17_s21 = sadd.s32 1, %s659_s21  }
  0x2a   : > { %p14_p4 = scmp.ge.s32.totalorder %s17_s21, 4  }
  0x2c   :  { %16 = sbr.rel (!%p14_p4) target bundleno = 1 (0x1), region = 127 }

</bundles_post_ra>
